<compile_context>
chip_gen: v7x
topology: tpu7x:2x2x1
jax: 0.10.0
libtpu: 0.0.40
codegen_flags: <defaults>
</compile_context>

<pallas_src>
import jax
import jax.numpy as jnp
from jax import lax
from jax.experimental import pallas as pl
from jax.experimental.pallas import tpu as pltpu

EPS = 1e-5          # PyTorch BatchNorm1d default eps
TRUE_HID = 100      # real hidden width of the PyTorch model
HID_PAD = 128       # lane-padded hidden width
LANE = 128
SUBLANE = 8
MAX_TILE = 1024     # review: ~1024-row tiles amortize per-grid-step overhead


def _round_up(x, m):
    return ((x + m - 1) // m) * m


def _vmem_limit_bytes():
    """Generation-aware scoped-VMEM limit.

    ~96 MiB on 128 MiB parts (v5e/v6e), ~48 MiB on v7x (64 MiB), and a safe
    fallback when hardware info is unavailable (e.g. interpret mode on CPU).
    """
    try:
        cap = int(pltpu.get_tpu_info().vmem_capacity_bytes)
    except Exception:
        cap = 64 * 1024 * 1024
    return max(32 * 1024 * 1024, min((cap * 3) // 4, 100 * 1024 * 1024))


def _choose_tile(bs, ff_p, vmem_limit, max_tile=MAX_TILE):
    """Largest multiple-of-8 batch tile (<= max_tile, <= padded batch) whose
    double-buffered blocks for the fused image/noise stage (the most
    VMEM-hungry stage: blocks scale with ff_p) fit ~60% of the VMEM budget."""
    bs8 = _round_up(max(bs, 1), SUBLANE)
    resident = 2 * (HID_PAD * ff_p) * 2                    # bf16 w3 + w4
    per_row = 2 * (2 * HID_PAD                             # z2 in    (bf16)
                   + 2 * ff_p                              # noise in (bf16)
                   + 4 * ff_p                              # img out  (f32)
                   + 4 * ff_p                              # noised   (f32)
                   + 2 * HID_PAD)                          # z4 out   (bf16)
    budget = int(vmem_limit * 0.6) - resident
    tile = budget // per_row if budget > 0 else SUBLANE
    tile = (tile // SUBLANE) * SUBLANE
    return int(max(SUBLANE, min(max_tile, tile, bs8)))


# --------------------------------------------------------------------------
# in-kernel helpers (only Python scalars are closed over)
# --------------------------------------------------------------------------
def _sigmoid(x):
    # exact sigmoid (review: approx reciprocal hurt decoded_msg accuracy)
    return 1.0 / (1.0 + jnp.exp(-x))


def _bn_relu(z, stats, gamma, beta, real_b):
    """BatchNorm1d (training mode, full-batch stats) + ReLU.

    stats: (2, N) reduced stats, row 0 = sum over real rows, row 1 = sum of sq.
    """
    inv_b = 1.0 / float(real_b)
    mean = stats[0:1, :] * inv_b
    var = jnp.maximum(stats[1:2, :] * inv_b - mean * mean, 0.0)
    y = (z - mean) * lax.rsqrt(var + EPS) * gamma + beta
    return jnp.maximum(y, 0.0)


def _partial_stats(stats_ref, z, step, real_b, tile_b):
    """Write this tile's masked per-feature sum / sumsq (batch-padding rows
    are masked out).  Per-tile partials -> the batch grid axis stays fully
    parallel (both TensorCores on v7x); reduced outside with a tiny jnp.sum."""
    rows = step * tile_b + lax.broadcasted_iota(jnp.int32, (1, tile_b), 1)
    mask = (rows < real_b).astype(jnp.float32)                        # (1, TB)
    stats_ref[0:1, :] = jnp.dot(mask, z, preferred_element_type=jnp.float32)
    stats_ref[1:2, :] = jnp.dot(mask, z * z, preferred_element_type=jnp.float32)


def _full_spec(arr):
    nd = arr.ndim
    return pl.BlockSpec(arr.shape, lambda *_, _nd=nd: (0,) * _nd)  # VMEM-resident


# --------------------------------------------------------------------------
# generic dense stage: [BN+ReLU] -> Linear -> [Sigmoid], + per-tile stats
# --------------------------------------------------------------------------
def _make_dense_kernel(real_b, tile_b, use_bn_in, use_sigmoid, track_stats):
    def kernel(*refs):
        it = iter(refs)
        x_ref = next(it)
        if use_bn_in:
            stats_ref, g_ref, be_ref = next(it), next(it), next(it)
        w_ref, b_ref = next(it), next(it)
        z_ref = next(it)
        stats_out_ref = next(it) if track_stats else None

        step = pl.program_id(0)
        x = x_ref[...].astype(jnp.float32)
        if use_bn_in:
            x = _bn_relu(x, stats_ref[...], g_ref[...], be_ref[...], real_b)
        # bf16 operands into the MXU, f32 accumulation; BN / sigmoid math in f32.
        z = jnp.dot(x.astype(w_ref.dtype), w_ref[...],
                    preferred_element_type=jnp.float32) + b_ref[...]
        if use_sigmoid:
            z = _sigmoid(z)
        z_ref[...] = z.astype(z_ref.dtype)
        if track_stats:
            _partial_stats(stats_out_ref, z, step, real_b, tile_b)

    return kernel


def _dense_stage(x, w, b, *, bn_stats=None, gamma=None, beta=None,
                 use_sigmoid=False, track_stats=True, tile_b, real_b,
                 vmem_limit):
    bp, n_in = x.shape
    n_out = w.shape[1]
    nt = bp // tile_b

    inputs = [x]
    in_specs = [pl.BlockSpec((tile_b, n_in), lambda i: (i, 0))]
    if bn_stats is not None:
        inputs += [bn_stats, gamma, beta]
        in_specs += [_full_spec(bn_stats), _full_spec(gamma), _full_spec(beta)]
    inputs += [w, b]
    in_specs += [_full_spec(w), _full_spec(b)]

    # chained intermediates in bf16 (halves HBM traffic); final sigmoid stage
    # (the returned decoded_msg) stays f32.
    out_dtype = jnp.float32 if use_sigmoid else jnp.bfloat16
    out_shape = [jax.ShapeDtypeStruct((bp, n_out), out_dtype)]
    out_specs = [pl.BlockSpec((tile_b, n_out), lambda i: (i, 0))]
    if track_stats:
        out_shape.append(jax.ShapeDtypeStruct((nt, 2, n_out), jnp.float32))
        out_specs.append(pl.BlockSpec((None, 2, n_out), lambda i: (i, 0, 0)))

    kernel = _make_dense_kernel(real_b, tile_b, bn_stats is not None,
                                use_sigmoid, track_stats)
    return pl.pallas_call(
        kernel,
        grid=(nt,),
        in_specs=in_specs,
        out_specs=out_specs,
        out_shape=out_shape,
        compiler_params=pltpu.CompilerParams(
            dimension_semantics=("parallel",),
            vmem_limit_bytes=vmem_limit),
    )(*inputs)


# --------------------------------------------------------------------------
# fused stage: BN2+ReLU -> Linear3 -> Sigmoid (image) -> +Gaussian noise
#              -> Linear4 (decoder head), + per-tile stats of z4
# --------------------------------------------------------------------------
def _make_image_noise_kernel(real_b, tile_b):
    def kernel(z2_ref, stats2_ref, g2_ref, be2_ref, w3_ref, b3_ref,
               w4_ref, b4_ref, noise_ref,
               img_ref, noised_ref, z4_ref, stats4_ref):
        step = pl.program_id(0)

        h2 = _bn_relu(z2_ref[...].astype(jnp.float32), stats2_ref[...],
                      g2_ref[...], be2_ref[...], real_b)
        img = _sigmoid(jnp.dot(h2.astype(w3_ref.dtype), w3_ref[...],
                               preferred_element_type=jnp.float32) + b3_ref[...])
        img_ref[...] = img

        # Additive Gaussian noise (pre-scaled by noise_size in the wrapper).
        # TODO(synk): kornia RandomAffine (rotate/translate/scale warp,
        # applied with p=noise_size) has no clean Pallas equivalent; omitted.
        noised = img + noise_ref[...].astype(jnp.float32)
        noised_ref[...] = noised

        z4 = jnp.dot(noised.astype(w4_ref.dtype), w4_ref[...],
                     preferred_element_type=jnp.float32) + b4_ref[...]
        z4_ref[...] = z4.astype(z4_ref.dtype)
        _partial_stats(stats4_ref, z4, step, real_b, tile_b)

    return kernel


def _image_noise_stage(z2, stats2, gamma2, beta2, w3, b3, w4, b4, noise,
                       *, tile_b, real_b, vmem_limit):
    bp = z2.shape[0]
    nt = bp // tile_b
    ffp = w3.shape[1]
    hid = w4.shape[1]

    inputs = [z2, stats2, gamma2, beta2, w3, b3, w4, b4, noise]
    in_specs = [
        pl.BlockSpec((tile_b, z2.shape[1]), lambda i: (i, 0)),
        _full_spec(stats2), _full_spec(gamma2), _full_spec(beta2),
        _full_spec(w3), _full_spec(b3), _full_spec(w4), _full_spec(b4),
        pl.BlockSpec((tile_b, ffp), lambda i: (i, 0)),      # noise (bf16)
    ]
    out_shape = [
        jax.ShapeDtypeStruct((bp, ffp), jnp.float32),   # image (flat, padded)
        jax.ShapeDtypeStruct((bp, ffp), jnp.float32),   # noised image (flat)
        jax.ShapeDtypeStruct((bp, hid), jnp.bfloat16),  # decoder pre-act z4
        jax.ShapeDtypeStruct((nt, 2, hid), jnp.float32),  # per-tile stats of z4
    ]
    out_specs = [
        pl.BlockSpec((tile_b, ffp), lambda i: (i, 0)),
        pl.BlockSpec((tile_b, ffp), lambda i: (i, 0)),
        pl.BlockSpec((tile_b, hid), lambda i: (i, 0)),
        pl.BlockSpec((None, 2, hid), lambda i: (i, 0, 0)),
    ]
    return pl.pallas_call(
        _make_image_noise_kernel(real_b, tile_b),
        grid=(nt,),
        in_specs=in_specs,
        out_specs=out_specs,
        out_shape=out_shape,
        compiler_params=pltpu.CompilerParams(
            dimension_semantics=("parallel",),
            vmem_limit_bytes=vmem_limit),
    )(*inputs)


# --------------------------------------------------------------------------
# parameters (PyTorch-default-style init, zero-padded to lane-aligned shapes)
# --------------------------------------------------------------------------
def init_params(key, msg_size, frame_size, weight_dtype=jnp.bfloat16):
    ff = frame_size * frame_size
    msg_p = _round_up(msg_size, LANE)
    ff_p = _round_up(ff, LANE)
    true_dims = [(msg_size, TRUE_HID), (TRUE_HID, TRUE_HID), (TRUE_HID, ff),
                 (ff, TRUE_HID), (TRUE_HID, TRUE_HID), (TRUE_HID, msg_size)]
    pad_dims = [(msg_p, HID_PAD), (HID_PAD, HID_PAD), (HID_PAD, ff_p),
                (ff_p, HID_PAD), (HID_PAD, HID_PAD), (HID_PAD, msg_p)]
    params = {}
    keys = jax.random.split(key, 2 * len(true_dims))
    for n, ((fi, fo), (fip, fop)) in enumerate(zip(true_dims, pad_dims)):
        bound = 1.0 / float(fi) ** 0.5
        # stored as (in, out) so the kernel does x @ W  (== x @ W_pt.T)
        w = jax.random.uniform(keys[2 * n], (fi, fo), jnp.float32, -bound, bound)
        b = jax.random.uniform(keys[2 * n + 1], (fo,), jnp.float32, -bound, bound)
        params[f"w{n + 1}"] = (jnp.zeros((fip, fop), jnp.float32)
                               .at[:fi, :fo].set(w).astype(weight_dtype))
        params[f"b{n + 1}"] = jnp.zeros((1, fop), jnp.float32).at[0, :fo].set(b)
    # BN affine params (gamma=1, beta=0 on real lanes; 0 on padded lanes so the
    # garbage lanes are killed). BN follows linears 1,2 (encoder), 4,5 (decoder).
    for layer in (1, 2, 4, 5):
        params[f"g{layer}"] = (jnp.zeros((1, HID_PAD), jnp.float32)
                               .at[0, :TRUE_HID].set(1.0))
        params[f"be{layer}"] = jnp.zeros((1, HID_PAD), jnp.float32)
    return params


# --------------------------------------------------------------------------
# forward_msg equivalent
# --------------------------------------------------------------------------
def fcinvae_forward_msg(msg, params, noise_key, noise_size, frame_size,
                        *, max_batch_tile=MAX_TILE):
    bs, msg_size = msg.shape
    ff = frame_size * frame_size
    msg_p = params["w1"].shape[0]
    ff_p = params["w3"].shape[1]

    vmem_limit = _vmem_limit_bytes()
    tile_b = _choose_tile(bs, ff_p, vmem_limit, max_batch_tile)
    bp = _round_up(bs, tile_b)

    x = jnp.zeros((bp, msg_p), jnp.float32)
    x = x.at[:bs, :msg_size].set(msg.astype(jnp.float32))

    # kornia RandomGaussianNoise(mean=0, std=noise_size, p=1): noise generated
    # host-side (the hardware PRNG primitive has no CPU/interpret lowering),
    # pre-scaled, stored bf16 (random values -> precision irrelevant).
    noise = (float(noise_size) *
             jax.random.normal(noise_key, (bp, ff_p), jnp.float32)
             ).astype(jnp.bfloat16)

    reduce_stats = lambda p: jnp.sum(p, axis=0)   # (nt,2,N) -> (2,N), tiny

    # ----- encoder -----
    z1, ps1 = _dense_stage(x, params["w1"], params["b1"],
                           tile_b=tile_b, real_b=bs, vmem_limit=vmem_limit)
    z2, ps2 = _dense_stage(z1, params["w2"], params["b2"],
                           bn_stats=reduce_stats(ps1), gamma=params["g1"],
                           beta=params["be1"], tile_b=tile_b, real_b=bs,
                           vmem_limit=vmem_limit)
    # ----- encoder head + gaussian noise + first decoder linear (fused) -----
    img_flat, noised_flat, z4, ps4 = _image_noise_stage(
        z2, reduce_stats(ps2), params["g2"], params["be2"], params["w3"],
        params["b3"], params["w4"], params["b4"], noise,
        tile_b=tile_b, real_b=bs, vmem_limit=vmem_limit)
    # ----- decoder -----
    z5, ps5 = _dense_stage(z4, params["w5"], params["b5"],
                           bn_stats=reduce_stats(ps4), gamma=params["g4"],
                           beta=params["be4"], tile_b=tile_b, real_b=bs,
                           vmem_limit=vmem_limit)
    (dec_p,) = _dense_stage(z5, params["w6"], params["b6"],
                            bn_stats=reduce_stats(ps5), gamma=params["g5"],
                            beta=params["be5"], use_sigmoid=True,
                            track_stats=False, tile_b=tile_b, real_b=bs,
                            vmem_limit=vmem_limit)

    image = img_flat[:bs, :ff].reshape(bs, 1, frame_size, frame_size)    # NCHW
    noised_image = noised_flat[:bs, :ff].reshape(bs, 1, frame_size, frame_size)
    decoded = dec_p[:bs, :msg_size]
    return {"msg": msg, "image": image, "noised_image": noised_image,
            "decoded_msg": decoded}


if __name__ == "__main__":
    msg_size = 8
    frame_size = 16
    bs = 2
    noise_size = 0.1

    root = jax.random.PRNGKey(0)
    k_params, k_msg, k_noise = jax.random.split(root, 3)

    params = init_params(k_params, msg_size, frame_size)
    # FCInvAE.sample_msg: torch.rand(bs, msg_size) -> uniform[0,1)
    msg = jax.random.uniform(k_msg, (bs, msg_size), jnp.float32)

    out = fcinvae_forward_msg(msg, params, k_noise, noise_size, frame_size)
    jax.block_until_ready(out)

    assert out["msg"].shape == (bs, msg_size)
    assert out["image"].shape == (bs, 1, frame_size, frame_size)
    assert out["noised_image"].shape == (bs, 1, frame_size, frame_size)
    assert out["decoded_msg"].shape == (bs, msg_size)
    for v in out.values():
        assert bool(jnp.all(jnp.isfinite(v)))
    # sigmoid outputs must live in (0, 1)
    assert bool(jnp.all((out["image"] >= 0.0) & (out["image"] <= 1.0)))
    assert bool(jnp.all((out["decoded_msg"] >= 0.0) & (out["decoded_msg"] <= 1.0)))
    print("KERNEL_OK")
</pallas_src>

<mosaic_0001>
module attributes {stable_mosaic.version = 11 : i64} {
  func.func @kernel(%arg0: i32, %arg1: memref<8x128xf32, #tpu.memory_space<vmem>>, %arg2: memref<128x128xbf16, #tpu.memory_space<vmem>>, %arg3: memref<1x128xf32, #tpu.memory_space<vmem>>, %arg4: memref<8x128xbf16, #tpu.memory_space<vmem>>, %arg5: memref<1x2x128xf32, #tpu.memory_space<vmem>>) attributes {dimension_semantics = [#tpu.dimension_semantics<parallel>], iteration_bounds = array<i64: 1>, scalar_prefetch = 0 : i64, scratch_operands = 0 : i64, tpu.core_type = #tpu.core_type<tc>, window_params = [{transform_indices = @transform_0, window_bounds = array<i64: 8, 128>}, {pipeline_mode = #tpu.pipeline_mode<synchronous>, transform_indices = @transform_1, window_bounds = array<i64: 128, 128>}, {pipeline_mode = #tpu.pipeline_mode<synchronous>, transform_indices = @transform_2, window_bounds = array<i64: 1, 128>}, {transform_indices = @transform_3, window_bounds = array<i64: 8, 128>}, {transform_indices = @transform_4, window_bounds = array<i64: 1, 2, 128>}]} {
    %c0 = arith.constant 0 : index
    %c0_0 = arith.constant 0 : index
    %0 = vector.load %arg1[%c0, %c0_0] : memref<8x128xf32, #tpu.memory_space<vmem>>, vector<8x128xf32>
    %1 = arith.truncf %0 : vector<8x128xf32> to vector<8x128xbf16>
    %c0_1 = arith.constant 0 : index
    %c0_2 = arith.constant 0 : index
    %2 = vector.load %arg2[%c0_1, %c0_2] : memref<128x128xbf16, #tpu.memory_space<vmem>>, vector<128x128xbf16>
    %cst = arith.constant dense<0.000000e+00> : vector<8x128xf32>
    %3 = tpu.matmul %1, %2, %cst {dimension_numbers = #tpu.dot_dimension_numbers<[1], [0], [0], [1], [0, 0, 1, 1], [], []>} : vector<8x128xbf16>, vector<128x128xbf16>, vector<8x128xf32> -> vector<8x128xf32>
    %c0_3 = arith.constant 0 : index
    %c0_4 = arith.constant 0 : index
    %4 = vector.load %arg3[%c0_3, %c0_4] : memref<1x128xf32, #tpu.memory_space<vmem>>, vector<1x128xf32>
    %5 = vector.broadcast %4 : vector<1x128xf32> to vector<8x128xf32>
    %6 = arith.addf %3, %5 : vector<8x128xf32>
    %7 = arith.truncf %6 : vector<8x128xf32> to vector<8x128xbf16>
    %c0_5 = arith.constant 0 : index
    %c0_6 = arith.constant 0 : index
    %8 = vector.load %arg4[%c0_5, %c0_6] : memref<8x128xbf16, #tpu.memory_space<vmem>>, vector<8x128xbf16>
    tpu.vector_store %arg4[%c0_5, %c0_6], %7 {strides = array<i32>} : memref<8x128xbf16, #tpu.memory_space<vmem>>, vector<8x128xbf16>,
    %c8_i32 = arith.constant 8 : i32
    %9 = arith.muli %arg0, %c8_i32 : i32
    %10 = tpu.iota {dimensions = array<i32: 1>} : vector<1x8xi32>
    %11 = vector.broadcast %9 : i32 to vector<1x8xi32>
    %12 = arith.addi %11, %10 : vector<1x8xi32>
    %c2_i32 = arith.constant 2 : i32
    %13 = vector.broadcast %c2_i32 : i32 to vector<1x8xi32>
    %14 = arith.cmpi slt, %12, %13 : vector<1x8xi32>
    %15 = arith.extui %14 : vector<1x8xi1> to vector<1x8xi32>
    %16 = arith.sitofp %15 : vector<1x8xi32> to vector<1x8xf32>
    %cst_7 = arith.constant dense<0.000000e+00> : vector<1x128xf32>
    %17 = tpu.matmul %16, %6, %cst_7 {dimension_numbers = #tpu.dot_dimension_numbers<[1], [0], [0], [1], [0, 0, 1, 1], [], []>} : vector<1x8xf32>, vector<8x128xf32>, vector<1x128xf32> -> vector<1x128xf32>
    %c0_8 = arith.constant 0 : index
    %c0_9 = arith.constant 0 : index
    %c0_10 = arith.constant 0 : index
    %18 = vector.load %arg5[%c0_8, %c0_9, %c0_10] : memref<1x2x128xf32, #tpu.memory_space<vmem>>, vector<1x1x128xf32>
    %19 = vector.shape_cast %18 : vector<1x1x128xf32> to vector<1x128xf32>
    %20 = vector.shape_cast %17 : vector<1x128xf32> to vector<1x1x128xf32>
    tpu.vector_store %arg5[%c0_8, %c0_9, %c0_10], %20 {strides = array<i32>} : memref<1x2x128xf32, #tpu.memory_space<vmem>>, vector<1x1x128xf32>,
    %21 = arith.mulf %6, %6 : vector<8x128xf32>
    %cst_11 = arith.constant dense<0.000000e+00> : vector<1x128xf32>
    %22 = tpu.matmul %16, %21, %cst_11 {dimension_numbers = #tpu.dot_dimension_numbers<[1], [0], [0], [1], [0, 0, 1, 1], [], []>} : vector<1x8xf32>, vector<8x128xf32>, vector<1x128xf32> -> vector<1x128xf32>
    %c0_12 = arith.constant 0 : index
    %c1 = arith.constant 1 : index
    %c0_13 = arith.constant 0 : index
    %23 = vector.load %arg5[%c0_12, %c1, %c0_13] : memref<1x2x128xf32, #tpu.memory_space<vmem>>, vector<1x1x128xf32>
    %24 = vector.shape_cast %23 : vector<1x1x128xf32> to vector<1x128xf32>
    %25 = vector.shape_cast %22 : vector<1x128xf32> to vector<1x1x128xf32>
    tpu.vector_store %arg5[%c0_12, %c1, %c0_13], %25 {strides = array<i32>} : memref<1x2x128xf32, #tpu.memory_space<vmem>>, vector<1x1x128xf32>,
    return
  }
  func.func @transform_0(%arg0: i32) -> (i32, i32) {
    %c0_i32 = arith.constant 0 : i32
    %c0_i32_0 = arith.constant 0 : i32
    return %arg0, %c0_i32 : i32, i32
  }
  func.func @transform_1(%arg0: i32) -> (i32, i32) {
    %c0_i32 = arith.constant 0 : i32
    %c0_i32_0 = arith.constant 0 : i32
    %c0_i32_1 = arith.constant 0 : i32
    return %c0_i32, %c0_i32_0 : i32, i32
  }
  func.func @transform_2(%arg0: i32) -> (i32, i32) {
    %c0_i32 = arith.constant 0 : i32
    %c0_i32_0 = arith.constant 0 : i32
    %c0_i32_1 = arith.constant 0 : i32
    return %c0_i32, %c0_i32_0 : i32, i32
  }
  func.func @transform_3(%arg0: i32) -> (i32, i32) {
    %c0_i32 = arith.constant 0 : i32
    %c0_i32_0 = arith.constant 0 : i32
    return %arg0, %c0_i32 : i32, i32
  }
  func.func @transform_4(%arg0: i32) -> (i32, i32, i32) {
    %c0_i32 = arith.constant 0 : i32
    %c0_i32_0 = arith.constant 0 : i32
    %c0_i32_1 = arith.constant 0 : i32
    return %arg0, %c0_i32, %c0_i32_0 : i32, i32, i32
  }
}

</mosaic_0001>

<bundles_post_ra>
// kernel: tpu_custom_call.1
= control target key start
LH: loop header
LB: loop body
LE: loop exit
PB: predicated region body
PF: predicated region fallthrough
CT: control target
= control target key end

     0   :  { %10 = vsyncpa [#allocation3], 0  ;;  %s606_s0 = inlined_call_operand.hbm [shape: f32[8,128], index: 0, kind: input, shape index: {}]   ;;  %s607_s1 = inlined_call_operand.hbm [shape: bf16[128,128], index: 1, kind: input, shape index: {}]   ;;  %s608_s2 = inlined_call_operand.vmem [shape: f32[1,128], index: 2, kind: input, shape index: {}]   ;;  %s609_s3 = inlined_call_operand.hbm [shape: bf16[8,128], index: 3, kind: output, shape index: {0}]   ;;  %s610_s4 = inlined_call_operand.hbm [shape: f32[1,2,128], index: 4, kind: output, shape index: {1}]  }
   0x1   :  { %11 = vsyncpa [#allocation6], 0 }
   0x2   :  { %12 = vsyncpa [#allocation4], 0 }
   0x3   :  { %13 = vsyncpa [#allocation9], 0  ;;  %s512_s15 = smov [#allocation2]   ;;  %s513_s17 = smov [#allocation5]  }
   0x4   :  { %s20_s16 = sshll.u32 %s512_s15, 4  ;;  %s29_s18 = sshll.u32 %s513_s17, 4  ;;  %s21_s16 = int_to_ptr.vmem [resolvable:$true] %s20_s16  ;;  %s545_s18 = int_to_ptr.vmem [resolvable:$true] %s29_s18 }
   0x5   :  { %s416_s21 = scalar_lea.hbm %s606_s0, 128 }
   0x6   :  { %p417_p0 = scmp.ne.s32.totalorder %s606_s0, %s416_s21  ;;  %p420_p1 = scmp.lt.u32.totalorder %s416_s21, %s606_s0 }
   0x8   :  { %p422_p2 = pnand %p420_p1, %p417_p0 }
   0xa   :  { %425 = shalt.err (!%p422_p2)
}
   0xb   :  { %s426_s26 = scalar_lea.vmem %s21_s16, 128  ;;  %p431_p4 = scmp.lt.s32.totalorder %s21_s16, %s21_s16 }
   0xc   :  { %p427_p3 = scmp.ne.s32.totalorder %s21_s16, %s426_s26  ;;  %p432_p5 = scmp.lt.s32.totalorder %s426_s26, %s426_s26 }
   0xe   :  { %p433_p6 = por %p432_p5, %p431_p4 }
  0x10   :  { %p434_p7 = pnand %p433_p6, %p427_p3 }
  0x12   :  { %437 = shalt.err (!%p434_p7)
}
  0x13   :  { %23 = dma.hbm_to_vmem [thread:$0]  %s606_s0, 128, %s21_s16, [#allocation3]  }
  0x14   :  { %s438_s5 = scalar_lea.hbm %s607_s1, 1024 }
  0x15   :  { %p439_p8 = scmp.ne.s32.totalorder %s607_s1, %s438_s5  ;;  %p442_p9 = scmp.lt.u32.totalorder %s438_s5, %s607_s1 }
  0x17   :  { %p444_p10 = pnand %p442_p9, %p439_p8 }
  0x19   :  { %447 = shalt.err (!%p444_p10)
}
  0x1a   :  { %s448_s10 = scalar_lea.vmem %s545_s18, 1024  ;;  %p453_p12 = scmp.lt.s32.totalorder %s545_s18, %s545_s18 }
  0x1b   :  { %p449_p11 = scmp.ne.s32.totalorder %s545_s18, %s448_s10  ;;  %p454_p13 = scmp.lt.s32.totalorder %s448_s10, %s448_s10 }
  0x1d   :  { %p455_p0 = por %p454_p13, %p453_p12 }
  0x1f   :  { %p456_p1 = pnand %p455_p0, %p449_p11 }
  0x21   :  { %459 = shalt.err (!%p456_p1)
}
  0x22   :  { %s514_s0 = smov 64   ;;  %s515_s11 = smov 4  }
  0x23   :  { %35 = dma.hbm_to_vmem [thread:$0]  %s607_s1, 1024, %s545_s18, [#allocation6], %s514_s0, %s514_s0, %s515_s11  }
  0x24   :  { %504 = dma.done.wait [#allocation3], 128  }
  0x25   :  { %505 = vsyncadd [#allocation3], 4294967168 }
  0x26   :  { %506 = dma.done.wait [#allocation6], 1024  }
  0x27   :  { %507 = vsyncadd [#allocation6], 4294966272  ;;  %v516_v0 = vmov 0.0   ;;  %vm517_vm0 = vmmov 0   ;;  %v408_v1 = vld [vmem:[#allocation5] sm:$0xff]   ;;  %v409_v2 = vld [vmem:[#allocation5 + $0x8] sm:$0xff]   ;;  %v161_v11 = vlaneseq }
  0x28   :  { %370 = vmatprep.subr.bf16.mxu0 %v516_v0  ;;  %386 = vmatprep.mubr.msk.bf16.mxu0 %vm517_vm0, %v516_v0  ;;  %v410_v3 = vld [vmem:[#allocation5 + $0x10] sm:$0xff]   ;;  %v411_v4 = vld [vmem:[#allocation5 + $0x18] sm:$0xff]   ;;  %v412_v5 = vld [vmem:[#allocation5 + $0x20] sm:$0xff]   ;;  %vm168_vm2 = vcmask 64512   ;;  %s518_s15 = smov [#allocation7]  }
  0x29   :  { %390 = vmatprep.subr.mxu1 %v516_v0  ;;  %392 = vmatprep.mubr.msk.f32.mxu1 %vm517_vm0, %v516_v0  ;;  %v413_v6 = vld [vmem:[#allocation5 + $0x28] sm:$0xff]   ;;  %v414_v7 = vld [vmem:[#allocation5 + $0x30] sm:$0xff]   ;;  %v415_v8 = vld [vmem:[#allocation5 + $0x38] sm:$0xff]   ;;  %v162_v12 = vand.u32 127, %v161_v11 }
  0x2a   :  { %371 = vmatpush3.bf16.msra.mxu0 %v408_v1  ;;  %v45_v9 = vld [vmem:[#allocation2] sm:$0xff] }
  0x2b   :  { %372 = vmatprep.subr.bf16.mxu0 %v516_v0  ;;  %v46_v10 = vpack.c.bf16 %v45_v9, %v45_v9  ;;  %v345_v13 = vld [vmem:[%s608_s2] ss:$0 sm:$0xff]  ;;  %vm165_vm1 = vcmp.lt.s32.totalorder %v162_v12, 2  ;;  %s321_s2 = sshll.u32 %s518_s15, 4  ;;  %s322_s2 = int_to_ptr.vmem [resolvable:$true] %s321_s2 }
  0x2c   :  { %v354_v17 = vsel %vm165_vm1, 1.0, %v516_v0  ;;  %s460_s16 = scalar_lea.vmem %s322_s2, 64  ;;  %p465_p3 = scmp.lt.s32.totalorder %s322_s2, %s322_s2 }
  0x2d   :  { %p461_p2 = scmp.ne.s32.totalorder %s322_s2, %s460_s16  ;;  %p466_p4 = scmp.lt.s32.totalorder %s460_s16, %s460_s16 }
  0x2e   :  { %373 = vmatpush3.bf16.msra.mxu0 %v409_v2 }
  0x2f   :  { %374 = vmatprep.subr.bf16.mxu0 %v516_v0  ;;  %p467_p5 = por %p466_p4, %p465_p3 }
  0x31   :  { %p468_p6 = pnand %p467_p5, %p461_p2 }
  0x32   :  { %375 = vmatpush3.bf16.msra.mxu0 %v410_v3 }
  0x33   :  { %376 = vmatprep.subr.bf16.mxu0 %v516_v0 }
  0x36   :  { %377 = vmatpush3.bf16.msra.mxu0 %v411_v4 }
  0x37   :  { %378 = vmatprep.subr.bf16.mxu0 %v516_v0 }
  0x3a   :  { %379 = vmatpush3.bf16.msra.mxu0 %v412_v5 }
  0x3b   :  { %380 = vmatprep.subr.bf16.mxu0 %v516_v0 }
  0x3e   :  { %381 = vmatpush3.bf16.msra.mxu0 %v413_v6 }
  0x3f   :  { %382 = vmatprep.subr.bf16.mxu0 %v516_v0 }
  0x42   :  { %383 = vmatpush3.bf16.msra.mxu0 %v414_v7 }
  0x43   :  { %384 = vmatprep.subr.bf16.mxu0 %v516_v0 }
  0x46   :  { %385 = vmatpush3.bf16.msra.mxu0 %v415_v8 }
  0x49   :  { %387 = vmatmul.mubr.bf16.vlgmr.msra.gmra.mrb[0].mxu0 %v46_v10 }
 0x11c   :  { %v152_v14 = vpop.f32.mrb[0].mxu0 }
 0x11d   :  { %v153_v15 = vadd.f32 %v345_v13, %v152_v14  ;;  %v388_v16 = vpop.f32.mrb[1].mxu0 }
 0x11e   :  { %v155_v18 = vpop.f32.mrb[2].mxu0 }
 0x11f   :  { %v243_v19 = vmul.f32 %v153_v15, %v153_v15  ;;  %v389_v20 = vpop.f32.mrb[3].mxu0  ;;  %391 = vmatpush3.msra.mxu1 %v153_v15  ;;  %v158_v21 = vpack.c.bf16 %v153_v15, %v153_v15 }
 0x120   :  { %393 = vmatmul.mubr.msk.f32.vlgmr.msra.gmra.mrb[0].mxu1 %vm168_vm2, %v354_v17  ;;  %395 = vmatprep.subr.mxu1 %v516_v0 }
 0x121   :  { %396 = vmatpush3.msra.mxu1 %v243_v19  ;;  %397 = vmatprep.mubr.msk.f32.mxu1 %vm517_vm0, %v516_v0  ;;  %159 = vst [vmem:[#allocation7] sm:$0xf] %v158_v21 }
 0x124   :  { %398 = vmatmul.mubr.msk.f32.vlgmr.msra.gmra.mrb[2].mxu1 %vm168_vm2, %v354_v17 }
 0x125   :  { %471 = shalt.err (!%p468_p6)
}
 0x126   :  { %s472_s19 = scalar_lea.hbm %s609_s3, 64 }
 0x127   :  { %p473_p7 = scmp.ne.s32.totalorder %s609_s3, %s472_s19  ;;  %p476_p8 = scmp.lt.u32.totalorder %s472_s19, %s609_s3 }
 0x129   :  { %p478_p9 = pnand %p476_p8, %p473_p7 }
 0x12b   :  { %481 = shalt.err (!%p478_p9)
}
 0x12c   :  { %324 = dma.vmem_to_hbm [thread:$0]  %s322_s2, 64, %s609_s3, [#allocation4]  }
 0x12d   :  { %s519_s26 = smov [#allocation8]  }
 0x12e   :  { %s331_s27 = sshll.u32 %s519_s26, 4  ;;  %s332_s27 = int_to_ptr.vmem [resolvable:$true] %s331_s27 }
 0x12f   :  { %s482_s28 = scalar_lea.vmem %s332_s27, 32  ;;  %p487_p11 = scmp.lt.s32.totalorder %s332_s27, %s332_s27 }
 0x130   :  { %p483_p10 = scmp.ne.s32.totalorder %s332_s27, %s482_s28  ;;  %p488_p12 = scmp.lt.s32.totalorder %s482_s28, %s482_s28 }
 0x132   :  { %p489_p13 = por %p488_p12, %p487_p11 }
 0x134   :  { %p490_p0 = pnand %p489_p13, %p483_p10 }
 0x1f3   :  { %v238_v22 = vpop.f32.mrb[0].mxu1 }
 0x1f4   :  { %242 = vst [vmem:[#allocation8] sm:$0x1] %v238_v22  ;;  %v394_v23 = vpop.f32.mrb[1].mxu1 }
 0x1f7   :  { %v310_v24 = vpop.f32.mrb[2].mxu1 }
 0x1f8   :  { %314 = vst [vmem:[#allocation8 + $0x1] sm:$0x1] %v310_v24  ;;  %v399_v25 = vpop.f32.mrb[3].mxu1 }
 0x1f9   :  { %493 = shalt.err (!%p490_p0)
}
 0x1fa   :  { %s494_s3 = scalar_lea.hbm %s610_s4, 32 }
 0x1fb   :  { %p495_p1 = scmp.ne.s32.totalorder %s610_s4, %s494_s3  ;;  %p498_p2 = scmp.lt.u32.totalorder %s494_s3, %s610_s4 }
 0x1fd   :  { %p500_p3 = pnand %p498_p2, %p495_p1 }
 0x1ff   :  { %503 = shalt.err (!%p500_p3)
}
 0x200   :  { %334 = dma.vmem_to_hbm [thread:$0]  %s332_s27, 32, %s610_s4, [#allocation9]  }
 0x201   :  { %508 = dma.done.wait [#allocation4], 64  }
 0x202   :  { %509 = vsyncadd [#allocation4], 4294967232 }
 0x203   :  { %510 = dma.done.wait [#allocation9], 32  }
 0x204   :  { %511 = vsyncadd [#allocation9], 4294967264 }
 0x205   :  { %341 = vsyncpa [#allocation3], 1 }
 0x206   :  { %342 = vsyncpa [#allocation6], 1 }
 0x207   :  { %343 = vsyncpa [#allocation4], 1 }
 0x208   :  { %344 = vsyncpa [#allocation9], 1 }

</bundles_post_ra>
